<compile_context>
chip_gen: v7x
topology: tpu7x:2x2x1
jax: 0.10.0
libtpu: 0.0.40
codegen_flags: <defaults>
</compile_context>

<pallas_src>
import jax
import jax.numpy as jnp
from jax.experimental import pallas as pl
from jax.experimental.pallas import tpu as pltpu

INPUT_SIZE = 10
HIDDEN_SIZE = 15
NUM_CLASSES = 3
BATCH = 4          # hard-coded by hidden.view(num_layers, 2, 4, hidden_size)
SEQ_LEN = 8


def _rnn_fc_kernel(x_ref, wi_ref, wh_ref, b_ref, wf_ref, bf_ref, out_ref):
    """Forward-direction tanh RNN over the full sequence + relu(fc1(h_T)).

    x_ref : (T*BT, I)  time-major, pre-flattened input slab for this group
    wi_ref: (I, H)     W_ih^T
    wh_ref: (H, H)     W_hh^T
    b_ref : (1, H)     b_ih + b_hh
    wf_ref: (C, H)     fc1 weight (PyTorch layout)
    bf_ref: (1, C)     fc1 bias
    out_ref:(BT, C)    relu(fc1(h_T))
    """
    seq_batch, _ = x_ref.shape
    bt = out_ref.shape[0]
    T = seq_batch // bt
    H = wh_ref.shape[0]

    # bf16 operands for the MXU (native on v5e/v6e/v7x); f32 accumulation.
    x_bf = x_ref[...].astype(jnp.bfloat16)
    wi_bf = wi_ref[...].astype(jnp.bfloat16)
    wh_bf = wh_ref[...].astype(jnp.bfloat16)

    # Hoisted input projection for all time steps in one MXU op, bias folded.
    # Rows [t*BT:(t+1)*BT] of xw are the (contiguous) time-step-t slab.
    xw = jnp.dot(x_bf, wi_bf, preferred_element_type=jnp.float32) + b_ref[...]

    h = jnp.zeros((bt, H), jnp.float32)

    # Fully unrolled static loop (T=8): the only serialized work per step is
    # the tiny bf16 (BT,H)x(H,H) MXU matmul + f32 add + tanh.
    for t in range(T):
        slab = xw[t * bt:(t + 1) * bt, :]
        hw = jnp.dot(h.astype(jnp.bfloat16), wh_bf,
                     preferred_element_type=jnp.float32)
        h = jnp.tanh(slab + hw)

    # Classifier head on VPU + lane reduction (no MXU round trip for 180 FLOPs).
    wf = wf_ref[...]                                   # (C, H) f32
    cols = []
    for c in range(NUM_CLASSES):
        cols.append(jnp.sum(h * wf[c:c + 1, :], axis=-1, keepdims=True))
    logits = jnp.concatenate(cols, axis=-1) + bf_ref[...]
    out_ref[...] = jnp.maximum(logits, 0.0)


def rnn_bidirection_forward(x, params, batch_tile=None):
    """x: (B, T, I) float32 (batch_first, like the PyTorch module).

    batch_tile: sequences processed per grid step (defaults to B -> one grid
    step, matching the module's hard-coded batch of 4).  With B a multiple of
    batch_tile, independent sequence groups are spread over a parallel grid
    axis (amortizes launch/DMA overhead; uses both TCs on v7x).
    """
    wi, wh, b, wf, bf = params
    B, T, I = x.shape
    H = HIDDEN_SIZE
    C = NUM_CLASSES

    bt = B if batch_tile is None else batch_tile
    assert B % bt == 0, "batch must be a multiple of batch_tile"
    num_tiles = B // bt

    # Wrapper-side layout plumbing (tiny, HBM/XLA-side): time-major, grouped,
    # flattened so the kernel never reshapes.
    # x_groups[g, t*bt + j, :] == x[g*bt + j, t, :]
    x_groups = (x.transpose(1, 0, 2)                # (T, B, I)
                  .reshape(T, num_tiles, bt, I)
                  .transpose(1, 0, 2, 3)            # (groups, T, bt, I)
                  .reshape(num_tiles, T * bt, I))

    cost = pl.CostEstimate(
        flops=2 * B * T * I * H + 2 * B * T * H * H + 2 * B * H * C,
        transcendentals=B * T * H,
        bytes_accessed=4 * (x.size + wi.size + wh.size + b.size
                            + wf.size + bf.size + B * C),
    )

    out_blocks = pl.pallas_call(
        _rnn_fc_kernel,
        out_shape=jax.ShapeDtypeStruct((num_tiles, bt, C), jnp.float32),
        grid=(num_tiles,),
        in_specs=[
            pl.BlockSpec((None, T * bt, I), lambda i: (i, 0, 0)),
            pl.BlockSpec((I, H), lambda i: (0, 0)),
            pl.BlockSpec((H, H), lambda i: (0, 0)),
            pl.BlockSpec((1, H), lambda i: (0, 0)),
            pl.BlockSpec((C, H), lambda i: (0, 0)),
            pl.BlockSpec((1, C), lambda i: (0, 0)),
        ],
        out_specs=pl.BlockSpec((None, bt, C), lambda i: (i, 0, 0)),
        compiler_params=pltpu.CompilerParams(
            dimension_semantics=("parallel",)),
        cost_estimate=cost,
    )(x_groups, wi, wh, b, wf, bf)

    return out_blocks.reshape(B, C)


def init_params(key):
    """Deterministic synthetic parameters, PyTorch-shaped then repacked."""
    ks = jax.random.split(key, 6)
    bound = 1.0 / jnp.sqrt(jnp.float32(HIDDEN_SIZE))
    # nn.RNN forward-direction params (PyTorch shapes).
    w_ih = jax.random.uniform(ks[0], (HIDDEN_SIZE, INPUT_SIZE),
                              minval=-bound, maxval=bound)
    w_hh = jax.random.uniform(ks[1], (HIDDEN_SIZE, HIDDEN_SIZE),
                              minval=-bound, maxval=bound)
    b_ih = jax.random.uniform(ks[2], (HIDDEN_SIZE,), minval=-bound, maxval=bound)
    b_hh = jax.random.uniform(ks[3], (HIDDEN_SIZE,), minval=-bound, maxval=bound)
    # nn.Linear(15, 3) params.
    fc_w = jax.random.uniform(ks[4], (NUM_CLASSES, HIDDEN_SIZE),
                              minval=-bound, maxval=bound)
    fc_b = jax.random.uniform(ks[5], (NUM_CLASSES,), minval=-bound, maxval=bound)

    # Repack for the kernel: RNN mats pre-transposed, RNN biases folded,
    # fc1 weight kept in (C, H) layout for the VPU head.
    wi = w_ih.T                                    # (I, H)
    wh = w_hh.T                                    # (H, H)
    b = (b_ih + b_hh).reshape(1, HIDDEN_SIZE)      # (1, H)
    wf = fc_w                                      # (C, H)
    bf = fc_b.reshape(1, NUM_CLASSES)              # (1, C)
    # TODO(synk): reverse-direction RNN weights exist in the PyTorch module but
    # are dead w.r.t. the returned tensor (only hn[dir=0] feeds fc1); omitted.
    return tuple(jnp.asarray(a, jnp.float32) for a in (wi, wh, b, wf, bf))


def reference_forward(x, params):
    """Pure-JAX reference of the same math (bf16 MXU operands, f32 accumulate)."""
    wi, wh, b, wf, bf = params
    B = x.shape[0]

    def _r(a):  # mimic the kernel's bf16 matmul operands
        return a.astype(jnp.bfloat16).astype(jnp.float32)

    h0 = jnp.zeros((B, HIDDEN_SIZE), jnp.float32)

    def step(h, x_t):
        pre = _r(x_t) @ _r(wi) + _r(h) @ _r(wh) + b
        return jnp.tanh(pre), None

    h, _ = jax.lax.scan(step, h0, jnp.transpose(x, (1, 0, 2)))
    return jnp.maximum(h @ wf.T + bf, 0.0)


if __name__ == "__main__":
    key = jax.random.PRNGKey(0)
    k_x, k_p, k_x2 = jax.random.split(key, 3)
    params = init_params(k_p)

    # Spec case: batch hard-coded to 4 by the PyTorch module, seq_len=8.
    x = jax.random.normal(k_x, (BATCH, SEQ_LEN, INPUT_SIZE), dtype=jnp.float32)
    out = jax.block_until_ready(rnn_bidirection_forward(x, params))
    ref = jax.block_until_ready(reference_forward(x, params))
    assert out.shape == (BATCH, NUM_CLASSES)
    assert jnp.allclose(out, ref, rtol=2e-2, atol=2e-3), (out, ref)

    # Stacked-sequence case: 4 independent groups of 8 sequences per call,
    # parallel grid axis amortizes launch/DMA overhead (2 TCs on v7x).
    xs = jax.random.normal(k_x2, (32, SEQ_LEN, INPUT_SIZE), dtype=jnp.float32)
    outs = jax.block_until_ready(
        rnn_bidirection_forward(xs, params, batch_tile=8))
    refs = jax.block_until_ready(reference_forward(xs, params))
    assert outs.shape == (32, NUM_CLASSES)
    assert jnp.allclose(outs, refs, rtol=2e-2, atol=2e-3), (outs, refs)

    print("KERNEL_OK")
</pallas_src>

<mosaic_0001>
module attributes {stable_mosaic.version = 11 : i64} {
  func.func @_rnn_fc_kernel(%arg0: i32, %arg1: memref<1x32x10xf32, #tpu.memory_space<vmem>>, %arg2: memref<10x15xf32, #tpu.memory_space<vmem>>, %arg3: memref<15x15xf32, #tpu.memory_space<vmem>>, %arg4: memref<1x15xf32, #tpu.memory_space<vmem>>, %arg5: memref<3x15xf32, #tpu.memory_space<vmem>>, %arg6: memref<1x3xf32, #tpu.memory_space<vmem>>, %arg7: memref<1x4x3xf32, #tpu.memory_space<vmem>>) attributes {dimension_semantics = [#tpu.dimension_semantics<parallel>], iteration_bounds = array<i64: 1>, scalar_prefetch = 0 : i64, scratch_operands = 0 : i64, tpu.core_type = #tpu.core_type<tc>, window_params = [{transform_indices = @transform_0, window_bounds = array<i64: 1, 32, 10>}, {pipeline_mode = #tpu.pipeline_mode<synchronous>, transform_indices = @transform_1, window_bounds = array<i64: 10, 15>}, {pipeline_mode = #tpu.pipeline_mode<synchronous>, transform_indices = @transform_2, window_bounds = array<i64: 15, 15>}, {pipeline_mode = #tpu.pipeline_mode<synchronous>, transform_indices = @transform_3, window_bounds = array<i64: 1, 15>}, {pipeline_mode = #tpu.pipeline_mode<synchronous>, transform_indices = @transform_4, window_bounds = array<i64: 3, 15>}, {pipeline_mode = #tpu.pipeline_mode<synchronous>, transform_indices = @transform_5, window_bounds = array<i64: 1, 3>}, {transform_indices = @transform_6, window_bounds = array<i64: 1, 4, 3>}]} {
    %c0 = arith.constant 0 : index
    %c0_0 = arith.constant 0 : index
    %c0_1 = arith.constant 0 : index
    %0 = vector.load %arg1[%c0, %c0_0, %c0_1] : memref<1x32x10xf32, #tpu.memory_space<vmem>>, vector<1x32x10xf32>
    %1 = vector.shape_cast %0 : vector<1x32x10xf32> to vector<32x10xf32>
    %2 = arith.truncf %1 : vector<32x10xf32> to vector<32x10xbf16>
    %c0_2 = arith.constant 0 : index
    %c0_3 = arith.constant 0 : index
    %3 = vector.load %arg2[%c0_2, %c0_3] : memref<10x15xf32, #tpu.memory_space<vmem>>, vector<10x15xf32>
    %4 = arith.truncf %3 : vector<10x15xf32> to vector<10x15xbf16>
    %c0_4 = arith.constant 0 : index
    %c0_5 = arith.constant 0 : index
    %5 = vector.load %arg3[%c0_4, %c0_5] : memref<15x15xf32, #tpu.memory_space<vmem>>, vector<15x15xf32>
    %6 = arith.truncf %5 : vector<15x15xf32> to vector<15x15xbf16>
    %cst = arith.constant dense<0.000000e+00> : vector<32x15xf32>
    %7 = tpu.matmul %2, %4, %cst {dimension_numbers = #tpu.dot_dimension_numbers<[1], [0], [0], [1], [0, 0, 1, 1], [], []>} : vector<32x10xbf16>, vector<10x15xbf16>, vector<32x15xf32> -> vector<32x15xf32>
    %c0_6 = arith.constant 0 : index
    %c0_7 = arith.constant 0 : index
    %8 = vector.load %arg4[%c0_6, %c0_7] : memref<1x15xf32, #tpu.memory_space<vmem>>, vector<1x15xf32>
    %9 = vector.broadcast %8 : vector<1x15xf32> to vector<32x15xf32>
    %10 = arith.addf %7, %9 : vector<32x15xf32>
    %cst_8 = arith.constant 0.000000e+00 : f32
    %11 = vector.broadcast %cst_8 : f32 to vector<4x15xf32>
    %12 = vector.extract_strided_slice %10 {offsets = [0, 0], sizes = [4, 15], strides = [1, 1]} : vector<32x15xf32> to vector<4x15xf32>
    %13 = arith.truncf %11 : vector<4x15xf32> to vector<4x15xbf16>
    %cst_9 = arith.constant dense<0.000000e+00> : vector<4x15xf32>
    %14 = tpu.matmul %13, %6, %cst_9 {dimension_numbers = #tpu.dot_dimension_numbers<[1], [0], [0], [1], [0, 0, 1, 1], [], []>} : vector<4x15xbf16>, vector<15x15xbf16>, vector<4x15xf32> -> vector<4x15xf32>
    %15 = arith.addf %12, %14 : vector<4x15xf32>
    %16 = math.tanh %15 : vector<4x15xf32>
    %17 = vector.extract_strided_slice %10 {offsets = [4, 0], sizes = [4, 15], strides = [1, 1]} : vector<32x15xf32> to vector<4x15xf32>
    %18 = arith.truncf %16 : vector<4x15xf32> to vector<4x15xbf16>
    %cst_10 = arith.constant dense<0.000000e+00> : vector<4x15xf32>
    %19 = tpu.matmul %18, %6, %cst_10 {dimension_numbers = #tpu.dot_dimension_numbers<[1], [0], [0], [1], [0, 0, 1, 1], [], []>} : vector<4x15xbf16>, vector<15x15xbf16>, vector<4x15xf32> -> vector<4x15xf32>
    %20 = arith.addf %17, %19 : vector<4x15xf32>
    %21 = math.tanh %20 : vector<4x15xf32>
    %22 = vector.extract_strided_slice %10 {offsets = [8, 0], sizes = [4, 15], strides = [1, 1]} : vector<32x15xf32> to vector<4x15xf32>
    %23 = arith.truncf %21 : vector<4x15xf32> to vector<4x15xbf16>
    %cst_11 = arith.constant dense<0.000000e+00> : vector<4x15xf32>
    %24 = tpu.matmul %23, %6, %cst_11 {dimension_numbers = #tpu.dot_dimension_numbers<[1], [0], [0], [1], [0, 0, 1, 1], [], []>} : vector<4x15xbf16>, vector<15x15xbf16>, vector<4x15xf32> -> vector<4x15xf32>
    %25 = arith.addf %22, %24 : vector<4x15xf32>
    %26 = math.tanh %25 : vector<4x15xf32>
    %27 = vector.extract_strided_slice %10 {offsets = [12, 0], sizes = [4, 15], strides = [1, 1]} : vector<32x15xf32> to vector<4x15xf32>
    %28 = arith.truncf %26 : vector<4x15xf32> to vector<4x15xbf16>
    %cst_12 = arith.constant dense<0.000000e+00> : vector<4x15xf32>
    %29 = tpu.matmul %28, %6, %cst_12 {dimension_numbers = #tpu.dot_dimension_numbers<[1], [0], [0], [1], [0, 0, 1, 1], [], []>} : vector<4x15xbf16>, vector<15x15xbf16>, vector<4x15xf32> -> vector<4x15xf32>
    %30 = arith.addf %27, %29 : vector<4x15xf32>
    %31 = math.tanh %30 : vector<4x15xf32>
    %32 = vector.extract_strided_slice %10 {offsets = [16, 0], sizes = [4, 15], strides = [1, 1]} : vector<32x15xf32> to vector<4x15xf32>
    %33 = arith.truncf %31 : vector<4x15xf32> to vector<4x15xbf16>
    %cst_13 = arith.constant dense<0.000000e+00> : vector<4x15xf32>
    %34 = tpu.matmul %33, %6, %cst_13 {dimension_numbers = #tpu.dot_dimension_numbers<[1], [0], [0], [1], [0, 0, 1, 1], [], []>} : vector<4x15xbf16>, vector<15x15xbf16>, vector<4x15xf32> -> vector<4x15xf32>
    %35 = arith.addf %32, %34 : vector<4x15xf32>
    %36 = math.tanh %35 : vector<4x15xf32>
    %37 = vector.extract_strided_slice %10 {offsets = [20, 0], sizes = [4, 15], strides = [1, 1]} : vector<32x15xf32> to vector<4x15xf32>
    %38 = arith.truncf %36 : vector<4x15xf32> to vector<4x15xbf16>
    %cst_14 = arith.constant dense<0.000000e+00> : vector<4x15xf32>
    %39 = tpu.matmul %38, %6, %cst_14 {dimension_numbers = #tpu.dot_dimension_numbers<[1], [0], [0], [1], [0, 0, 1, 1], [], []>} : vector<4x15xbf16>, vector<15x15xbf16>, vector<4x15xf32> -> vector<4x15xf32>
    %40 = arith.addf %37, %39 : vector<4x15xf32>
    %41 = math.tanh %40 : vector<4x15xf32>
    %42 = vector.extract_strided_slice %10 {offsets = [24, 0], sizes = [4, 15], strides = [1, 1]} : vector<32x15xf32> to vector<4x15xf32>
    %43 = arith.truncf %41 : vector<4x15xf32> to vector<4x15xbf16>
    %cst_15 = arith.constant dense<0.000000e+00> : vector<4x15xf32>
    %44 = tpu.matmul %43, %6, %cst_15 {dimension_numbers = #tpu.dot_dimension_numbers<[1], [0], [0], [1], [0, 0, 1, 1], [], []>} : vector<4x15xbf16>, vector<15x15xbf16>, vector<4x15xf32> -> vector<4x15xf32>
    %45 = arith.addf %42, %44 : vector<4x15xf32>
    %46 = math.tanh %45 : vector<4x15xf32>
    %47 = vector.extract_strided_slice %10 {offsets = [28, 0], sizes = [4, 15], strides = [1, 1]} : vector<32x15xf32> to vector<4x15xf32>
    %48 = arith.truncf %46 : vector<4x15xf32> to vector<4x15xbf16>
    %cst_16 = arith.constant dense<0.000000e+00> : vector<4x15xf32>
    %49 = tpu.matmul %48, %6, %cst_16 {dimension_numbers = #tpu.dot_dimension_numbers<[1], [0], [0], [1], [0, 0, 1, 1], [], []>} : vector<4x15xbf16>, vector<15x15xbf16>, vector<4x15xf32> -> vector<4x15xf32>
    %50 = arith.addf %47, %49 : vector<4x15xf32>
    %51 = math.tanh %50 : vector<4x15xf32>
    %c0_17 = arith.constant 0 : index
    %c0_18 = arith.constant 0 : index
    %52 = vector.load %arg5[%c0_17, %c0_18] : memref<3x15xf32, #tpu.memory_space<vmem>>, vector<3x15xf32>
    %53 = vector.extract_strided_slice %52 {offsets = [0, 0], sizes = [1, 15], strides = [1, 1]} : vector<3x15xf32> to vector<1x15xf32>
    %54 = vector.broadcast %53 : vector<1x15xf32> to vector<4x15xf32>
    %55 = arith.mulf %51, %54 : vector<4x15xf32>
    %cst_19 = arith.constant dense<0.000000e+00> : vector<4xf32>
    %56 = vector.multi_reduction <add>, %55, %cst_19 [1] : vector<4x15xf32> to vector<4xf32>
    %57 = vector.shape_cast %56 : vector<4xf32> to vector<4x1xf32>
    %58 = vector.extract_strided_slice %52 {offsets = [1, 0], sizes = [1, 15], strides = [1, 1]} : vector<3x15xf32> to vector<1x15xf32>
    %59 = vector.broadcast %58 : vector<1x15xf32> to vector<4x15xf32>
    %60 = arith.mulf %51, %59 : vector<4x15xf32>
    %cst_20 = arith.constant dense<0.000000e+00> : vector<4xf32>
    %61 = vector.multi_reduction <add>, %60, %cst_20 [1] : vector<4x15xf32> to vector<4xf32>
    %62 = vector.shape_cast %61 : vector<4xf32> to vector<4x1xf32>
    %63 = vector.extract_strided_slice %52 {offsets = [2, 0], sizes = [1, 15], strides = [1, 1]} : vector<3x15xf32> to vector<1x15xf32>
    %64 = vector.broadcast %63 : vector<1x15xf32> to vector<4x15xf32>
    %65 = arith.mulf %51, %64 : vector<4x15xf32>
    %cst_21 = arith.constant dense<0.000000e+00> : vector<4xf32>
    %66 = vector.multi_reduction <add>, %65, %cst_21 [1] : vector<4x15xf32> to vector<4xf32>
    %67 = vector.shape_cast %66 : vector<4xf32> to vector<4x1xf32>
    %68 = tpu.concatenate %57, %62, %67 in 1 : vector<4x1xf32>, vector<4x1xf32>, vector<4x1xf32> -> vector<4x3xf32>
    %c0_22 = arith.constant 0 : index
    %c0_23 = arith.constant 0 : index
    %69 = vector.load %arg6[%c0_22, %c0_23] : memref<1x3xf32, #tpu.memory_space<vmem>>, vector<1x3xf32>
    %70 = vector.broadcast %69 : vector<1x3xf32> to vector<4x3xf32>
    %71 = arith.addf %68, %70 : vector<4x3xf32>
    %cst_24 = arith.constant 0.000000e+00 : f32
    %72 = vector.broadcast %cst_24 : f32 to vector<4x3xf32>
    %73 = arith.maximumf %71, %72 : vector<4x3xf32>
    %c0_25 = arith.constant 0 : index
    %c0_26 = arith.constant 0 : index
    %c0_27 = arith.constant 0 : index
    %74 = vector.load %arg7[%c0_25, %c0_26, %c0_27] : memref<1x4x3xf32, #tpu.memory_space<vmem>>, vector<1x4x3xf32>
    %75 = vector.shape_cast %74 : vector<1x4x3xf32> to vector<4x3xf32>
    %76 = vector.shape_cast %73 : vector<4x3xf32> to vector<1x4x3xf32>
    tpu.vector_store %arg7[%c0_25, %c0_26, %c0_27], %76 {strides = array<i32>} : memref<1x4x3xf32, #tpu.memory_space<vmem>>, vector<1x4x3xf32>,
    return
  }
  func.func @transform_0(%arg0: i32) -> (i32, i32, i32) {
    %c0_i32 = arith.constant 0 : i32
    %c0_i32_0 = arith.constant 0 : i32
    %c0_i32_1 = arith.constant 0 : i32
    return %arg0, %c0_i32, %c0_i32_0 : i32, i32, i32
  }
  func.func @transform_1(%arg0: i32) -> (i32, i32) {
    %c0_i32 = arith.constant 0 : i32
    %c0_i32_0 = arith.constant 0 : i32
    %c0_i32_1 = arith.constant 0 : i32
    return %c0_i32, %c0_i32_0 : i32, i32
  }
  func.func @transform_2(%arg0: i32) -> (i32, i32) {
    %c0_i32 = arith.constant 0 : i32
    %c0_i32_0 = arith.constant 0 : i32
    %c0_i32_1 = arith.constant 0 : i32
    return %c0_i32, %c0_i32_0 : i32, i32
  }
  func.func @transform_3(%arg0: i32) -> (i32, i32) {
    %c0_i32 = arith.constant 0 : i32
    %c0_i32_0 = arith.constant 0 : i32
    %c0_i32_1 = arith.constant 0 : i32
    return %c0_i32, %c0_i32_0 : i32, i32
  }
  func.func @transform_4(%arg0: i32) -> (i32, i32) {
    %c0_i32 = arith.constant 0 : i32
    %c0_i32_0 = arith.constant 0 : i32
    %c0_i32_1 = arith.constant 0 : i32
    return %c0_i32, %c0_i32_0 : i32, i32
  }
  func.func @transform_5(%arg0: i32) -> (i32, i32) {
    %c0_i32 = arith.constant 0 : i32
    %c0_i32_0 = arith.constant 0 : i32
    %c0_i32_1 = arith.constant 0 : i32
    return %c0_i32, %c0_i32_0 : i32, i32
  }
  func.func @transform_6(%arg0: i32) -> (i32, i32, i32) {
    %c0_i32 = arith.constant 0 : i32
    %c0_i32_0 = arith.constant 0 : i32
    %c0_i32_1 = arith.constant 0 : i32
    return %arg0, %c0_i32, %c0_i32_0 : i32, i32, i32
  }
}

</mosaic_0001>

<bundles_post_ra>
// kernel: tpu_custom_call.1
= control target key start
LH: loop header
LB: loop body
LE: loop exit
PB: predicated region body
PF: predicated region fallthrough
CT: control target
= control target key end

     0   :  { %vm50_vm0 = vcmask 1044480   ;;  %vm107_vm1 = vcmask 1046528   ;;  %vm108_vm2 = vcmask 1047552   ;;  %v646_v2 = vmov 0.0   ;;  %s774_s1 = inlined_call_operand.vmem [shape: f32[10,15], index: 1, kind: input, shape index: {}]   ;;  %s775_s2 = inlined_call_operand.vmem [shape: f32[15,15], index: 2, kind: input, shape index: {}]   ;;  %s776_s0 = inlined_call_operand.vmem [shape: f32[1,32,10], index: 0, kind: input, shape index: {}]   ;;  %s777_s3 = inlined_call_operand.vmem [shape: f32[1,15], index: 3, kind: input, shape index: {}]   ;;  %s778_s4 = inlined_call_operand.vmem [shape: f32[3,15], index: 4, kind: input, shape index: {}]   ;;  %s779_s5 = inlined_call_operand.vmem [shape: f32[1,3], index: 5, kind: input, shape index: {}]   ;;  %s780_s6 = inlined_call_operand.vmem [shape: f32[1,4,3], index: 6, kind: output, shape index: {}]  }
   0x1   :  { %v30_v0 = vld [vmem:[%s774_s1] sm:$0xff]  ;;  %v31_v1 = vld [vmem:[%s774_s1 + $0x8] sm:$0x3]  ;;  %577 = vmatprep.subr.bf16.mxu1 %v646_v2  ;;  %vm43_vm3 = vcmask 80896   ;;  %v647_v6 = vmov 65535   ;;  %v26_v13 = vld [vmem:[%s776_s0 + $0x10] sm:$0xff] }
   0x2   :  { %v33_v3 = vld [vmem:[%s775_s2] sm:$0xff]  ;;  %v32_v4 = vpack.c.bf16 %v31_v1, %v30_v0  ;;  %v34_v5 = vld [vmem:[%s775_s2 + $0x8] sm:$0x7f]  ;;  %v109_v7 = vsel %vm107_vm1, 4294967295, %v647_v6  ;;  %v27_v14 = vld [vmem:[%s776_s0 + $0x18] sm:$0xff]  ;;  %vm648_vm4 = vmmov 0  }
   0x3   :  { %v24_v8 = vld [vmem:[%s776_s0] sm:$0xff]  ;;  %v25_v9 = vld [vmem:[%s776_s0 + $0x8] sm:$0xff]  ;;  %v35_v10 = vpack.c.bf16 %v34_v5, %v33_v3  ;;  %v110_v11 = vsel %vm108_vm2, %v109_v7, 0  ;;  %579 = vmatprep.mubr.msk.bf16.mxu1 %vm648_vm4, %v646_v2  ;;  %v29_v16 = vpack.c.bf16 %v27_v14, %v26_v13  ;;  %v649_v18 = vmov 0  }
   0x4   :  { %v28_v12 = vpack.c.bf16 %v25_v9, %v24_v8  ;;  %625 = vmatprep.subr.msk.bf16.mxu0 %vm50_vm0, %v32_v4  ;;  %v52_v15 = vsel %vm50_vm0, %v32_v4, 0  ;;  %v541_v19 = vld [vmem:[%s777_s3] ss:$0 sm:$0xff]  ;;  %vm103_vm5 = vcmask 121856   ;;  %vm502_vm6 = vcmask 121860  }
   0x5   :  { %572 = vmatpush3.bf16.msra.mxu0 %v52_v15  ;;  %v714_v17 = vand.u32 %v110_v11, %v35_v10  ;;  %vm522_vm7 = vcmask 7168   ;;  %vm524_vm8 = vcmask 15360   ;;  %vm535_vm9 = vcmask 23556  }
   0x6   :  { %573 = vmatprep.mubr.msk.bf16.mxu0 %vm43_vm3, %v28_v12  ;;  %583 = vmatprep.subr.bf16.mxu0 %v646_v2 }
   0x7   :  { %578 = vmatpush3.bf16.msra.mxu1 %v714_v17 }
   0x8   :  { %574 = vmatmul.mubr.msk.bf16.vlgmr.msra.gmra.mrb[0].mxu0 %vm43_vm3, %v29_v16  ;;  %589 = vmatprep.subr.bf16.mxu1 %v646_v2 }
   0x9   :  { %584 = vmatpush3.bf16.msra.mxu0 %v714_v17  ;;  %585 = vmatprep.mubr.msk.bf16.mxu0 %vm648_vm4, %v646_v2 }
   0xa   :  { %580 = vmatmul.mubr.bf16.vlgmr.msra.gmra.mrb[0].mxu1 %v649_v18  ;;  %595 = vmatprep.subr.bf16.mxu0 %v646_v2 }
   0xb   :  { %590 = vmatpush3.bf16.msra.mxu1 %v714_v17  ;;  %591 = vmatprep.mubr.msk.bf16.mxu1 %vm648_vm4, %v646_v2 }
   0xc   :  { %601 = vmatprep.subr.bf16.mxu1 %v646_v2 }
  0xdb   :  { %v575_v20 = vpop.f32.mrb[0].mxu0 }
  0xdc   :  { %v732_v21 = vadd.f32 %v575_v20, %v541_v19  ;;  %v88_v22 = vpop.f32.mrb[1].mxu0  ;;  %v497_v20 = vlaneseq }
  0xdd   :  { %v89_v23 = vadd.f32 %v541_v19, %v88_v22  ;;  %v148_v24 = vpop.f32.mrb[0].mxu1  ;;  %v576_v25 = vpop.f32.mrb[2].mxu0 }
  0xde   :  { %v734_v26 = vadd.f32 %v576_v25, %v541_v19  ;;  %v581_v27 = vpop.f32.mrb[1].mxu1  ;;  %v91_v28 = vpop.f32.mrb[3].mxu0 }
  0xdf   :  { %v154_v29 = vadd.f32 %v148_v24, %v89_v23  ;;  %v92_v30 = vadd.f32 %v541_v19, %v91_v28  ;;  %v151_v31 = vpop.f32.mrb[2].mxu1  ;;  %v498_v27 = vshrl.u32 %v497_v20, 7 }
  0xe0   :  { %v582_v32 = vpop.f32.mrb[3].mxu1 }
  0xe1   :  { %630 = vtanh.f32 %v154_v29  ;;  %v516_v28 = vsub.s32 2, %v498_v27  ;;  %v499_v29 = vsub.s32 0, %v498_v27  ;;  %v508_v31 = vsub.s32 1, %v498_v27 }
  0xeb   :  { %v631_v33 = vpop.eup %630 }
  0xec   :  { %v156_v34 = vpack.c.bf16 %v631_v33, %v631_v33 }
  0xee   :  { %586 = vmatmul.mubr.msk.bf16.vlgmr.msra.gmra.mrb[4].mxu0 %vm103_vm5, %v156_v34 }
  0xef   :  { %596 = vmatpush3.bf16.msra.mxu0 %v714_v17  ;;  %597 = vmatprep.mubr.msk.bf16.mxu0 %vm648_vm4, %v646_v2 }
  0xf0   :  { %607 = vmatprep.subr.bf16.mxu0 %v646_v2 }
 0x1c1   :  { %v194_v35 = vpop.f32.mrb[4].mxu0 }
 0x1c2   :  { %v201_v36 = vrot.slane %v194_v35, 4  ;;  %v587_v37 = vpop.f32.mrb[5].mxu0 }
 0x1c3   :  { %v197_v38 = vpop.f32.mrb[6].mxu0 }
 0x1c4   :  { %v203_v39 = vadd.f32 %v201_v36, %v89_v23  ;;  %v588_v40 = vpop.f32.mrb[7].mxu0 }
 0x1c6   :  { %632 = vtanh.f32 %v203_v39 }
 0x1d0   :  { %v633_v41 = vpop.eup %632 }
 0x1d1   :  { %v205_v42 = vpack.c.bf16 %v633_v41, %v633_v41 }
 0x1d3   :  { %v207_v43 = vrot.slane %v205_v42, 2  ;;  %v551_v42 = vld [vmem:[%s779_s5] ss:$0 sm:$0xff] }
 0x1d5   :  { %592 = vmatmul.mubr.msk.bf16.vlgmr.msra.gmra.mrb[4].mxu1 %vm103_vm5, %v207_v43 }
 0x1d6   :  { %602 = vmatpush3.bf16.msra.mxu1 %v714_v17  ;;  %603 = vmatprep.mubr.msk.bf16.mxu1 %vm648_vm4, %v646_v2 }
 0x1d7   :  { %613 = vmatprep.subr.bf16.mxu1 %v646_v2 }
 0x2a8   :  { %v245_v44 = vpop.f32.mrb[4].mxu1 }
 0x2a9   :  { %v251_v45 = vadd.f32 %v245_v44, %v92_v30  ;;  %v593_v46 = vpop.f32.mrb[5].mxu1 }
 0x2aa   :  { %v248_v47 = vpop.f32.mrb[6].mxu1 }
 0x2ab   :  { %634 = vtanh.f32 %v251_v45  ;;  %v594_v48 = vpop.f32.mrb[7].mxu1 }
 0x2b5   :  { %v635_v49 = vpop.eup %634 }
 0x2b6   :  { %v253_v50 = vpack.c.bf16 %v635_v49, %v635_v49 }
 0x2b8   :  { %598 = vmatmul.mubr.msk.bf16.vlgmr.msra.gmra.mrb[8].mxu0 %vm103_vm5, %v253_v50 }
 0x2b9   :  { %608 = vmatpush3.bf16.msra.mxu0 %v714_v17  ;;  %609 = vmatprep.mubr.msk.bf16.mxu0 %vm648_vm4, %v646_v2 }
 0x2ba   :  { %619 = vmatprep.subr.bf16.mxu0 %v646_v2 }
 0x38b   :  { %v291_v51 = vpop.f32.mrb[8].mxu0 }
 0x38c   :  { %v298_v52 = vrot.slane %v291_v51, 4  ;;  %v599_v53 = vpop.f32.mrb[9].mxu0 }
 0x38d   :  { %v294_v54 = vpop.f32.mrb[10].mxu0 }
 0x38e   :  { %v300_v55 = vadd.f32 %v298_v52, %v92_v30  ;;  %v600_v56 = vpop.f32.mrb[11].mxu0  ;;  %v496_v30 = vld [vmem:[%s778_s4] sm:$0x7] }
 0x38f   :  { %v517_v32 = vrot.slane %v496_v30, %v516_v28  ;;  %v500_v33 = vrot.slane %v496_v30, %v499_v29  ;;  %v509_v34 = vrot.slane %v496_v30, %v508_v31 }
 0x390   :  { %636 = vtanh.f32 %v300_v55 }
 0x39a   :  { %v637_v57 = vpop.eup %636 }
 0x39b   :  { %v302_v58 = vpack.c.bf16 %v637_v57, %v637_v57 }
 0x39d   :  { %v304_v59 = vrot.slane %v302_v58, 2 }
 0x39f   :  { %604 = vmatmul.mubr.msk.bf16.vlgmr.msra.gmra.mrb[8].mxu1 %vm103_vm5, %v304_v59 }
 0x3a0   :  { %614 = vmatpush3.bf16.msra.mxu1 %v714_v17  ;;  %615 = vmatprep.mubr.msk.bf16.mxu1 %vm648_vm4, %v646_v2 }
 0x472   :  { %v342_v60 = vpop.f32.mrb[8].mxu1 }
 0x473   :  { %v348_v61 = vadd.f32 %v342_v60, %v732_v21  ;;  %v605_v62 = vpop.f32.mrb[9].mxu1 }
 0x474   :  { %v345_v63 = vpop.f32.mrb[10].mxu1 }
 0x475   :  { %638 = vtanh.f32 %v348_v61  ;;  %v606_v0 = vpop.f32.mrb[11].mxu1 }
 0x47f   :  { %v639_v1 = vpop.eup %638 }
 0x480   :  { %v350_v3 = vpack.c.bf16 %v639_v1, %v639_v1 }
 0x482   :  { %610 = vmatmul.mubr.msk.bf16.vlgmr.msra.gmra.mrb[12].mxu0 %vm103_vm5, %v350_v3 }
 0x483   :  { %620 = vmatpush3.bf16.msra.mxu0 %v714_v17  ;;  %621 = vmatprep.mubr.msk.bf16.mxu0 %vm648_vm4, %v646_v2 }
 0x555   :  { %v388_v4 = vpop.f32.mrb[12].mxu0 }
 0x556   :  { %v395_v5 = vrot.slane %v388_v4, 4  ;;  %v611_v6 = vpop.f32.mrb[13].mxu0 }
 0x557   :  { %v391_v7 = vpop.f32.mrb[14].mxu0 }
 0x558   :  { %v397_v8 = vadd.f32 %v395_v5, %v732_v21  ;;  %v612_v9 = vpop.f32.mrb[15].mxu0 }
 0x55a   :  { %640 = vtanh.f32 %v397_v8 }
 0x564   :  { %v641_v10 = vpop.eup %640 }
 0x565   :  { %v399_v11 = vpack.c.bf16 %v641_v10, %v641_v10 }
 0x567   :  { %v401_v12 = vrot.slane %v399_v11, 2 }
 0x569   :  { %616 = vmatmul.mubr.msk.bf16.vlgmr.msra.gmra.mrb[12].mxu1 %vm103_vm5, %v401_v12 }
 0x63c   :  { %v439_v13 = vpop.f32.mrb[12].mxu1 }
 0x63d   :  { %v445_v14 = vadd.f32 %v439_v13, %v734_v26  ;;  %v617_v15 = vpop.f32.mrb[13].mxu1 }
 0x63e   :  { %v442_v16 = vpop.f32.mrb[14].mxu1 }
 0x63f   :  { %642 = vtanh.f32 %v445_v14  ;;  %v618_v2 = vpop.f32.mrb[15].mxu1 }
 0x649   :  { %v643_v17 = vpop.eup %642 }
 0x64a   :  { %v447_v18 = vpack.c.bf16 %v643_v17, %v643_v17 }
 0x64c   :  { %622 = vmatmul.mubr.msk.bf16.vlgmr.msra.gmra.mrb[16].mxu0 %vm103_vm5, %v447_v18 }
 0x71f   :  { %v485_v19 = vpop.f32.mrb[16].mxu0 }
 0x720   :  { %v492_v21 = vrot.slane %v485_v19, 4  ;;  %v623_v22 = vpop.f32.mrb[17].mxu0 }
 0x721   :  { %v488_v23 = vpop.f32.mrb[18].mxu0 }
 0x722   :  { %v494_v24 = vadd.f32 %v492_v21, %v734_v26  ;;  %v624_v25 = vpop.f32.mrb[19].mxu0 }
 0x724   :  { %644 = vtanh.f32 %v494_v24 }
 0x72e   :  { %v645_v35 = vpop.eup %644 }
 0x72f   :  { %v518_v36 = vmul.f32 %v645_v35, %v517_v32  ;;  %v501_v37 = vmul.f32 %v645_v35, %v500_v33  ;;  %v510_v26 = vmul.f32 %v645_v35, %v509_v34 }
 0x731   :  { %v519_v38 = vsel %vm502_vm6, %v518_v36, 0.0  ;;  %v503_v39 = vsel %vm502_vm6, %v501_v37, 0.0  ;;  %v511_v40 = vsel %vm502_vm6, %v510_v26, 0.0 }
 0x732   :  { %520 = vadd.xlane.f32.xlu1 %v519_v38  ;;  %504 = vadd.xlane.f32.xlu0 %v503_v39 }
 0x736   :  { %512 = vadd.xlane.f32.xlu0 %v511_v40 }
 0x7bf   :  { %v505_v41 = vpop.xlane.xlu0 %504  ;;  %v521_v44 = vpop.xlane.xlu1 %520 }
 0x7c3   :  { %v513_v43 = vpop.xlane.xlu0 %512 }
 0x7c4   :  { %v523_v45 = vsel %vm522_vm7, %v505_v41, %v513_v43 }
 0x7c5   :  { %v525_v46 = vsel %vm524_vm8, %v523_v45, %v521_v44 }
 0x7c6   :  { %v533_v47 = vadd.f32 %v551_v42, %v525_v46 }
 0x7c8   :  { %v534_v48 = vmax.f32 %v533_v47, 0.0 }
 0x7ca   :  { %536 = vst.msk [vmem:[%s780_s6 - $0x4] sm:$0xf0] %vm535_vm9, %v534_v48 }

</bundles_post_ra>
